<compile_context>
chip_gen: v5e
topology: v5e:2x2
jax: 0.10.0
libtpu: 0.0.40
codegen_flags: <defaults>
</compile_context>

<pallas_src>
import functools

import jax
import jax.numpy as jnp
from jax import lax
from jax.experimental import pallas as pl
from jax.experimental.pallas import tpu as pltpu


def _round_up(x, m):
    return (x + m - 1) // m * m


def _sublane_multiple(dtype):
    # f32 -> 8, bf16/f16 -> 16, int8/fp8 -> 32 rows per packed vreg group.
    return max(8, 32 // jnp.dtype(dtype).itemsize)


def _fc_int_kernel_direct(x_ref, w_ref, scale_ref, bias_ref, o_ref):
    """f32 output: accumulate directly into the resident output block."""
    k = pl.program_id(2)

    @pl.when(k == 0)
    def _():
        o_ref[...] = jnp.zeros_like(o_ref)

    # x_ref: (tm, tk), w_ref: (tn, tk) -> (tm, tn); contract last dims (trans-B,
    # handled natively by the MXU). Operands are bf16 (or int8/fp8), acc is f32.
    o_ref[...] += lax.dot_general(
        x_ref[...],
        w_ref[...],
        dimension_numbers=(((1,), (1,)), ((), ())),
        preferred_element_type=jnp.float32,
    )

    @pl.when(k == pl.num_programs(2) - 1)
    def _():
        # scale/bias are (1, tn) f32 rows, broadcast over the tm rows.
        o_ref[...] = o_ref[...] * scale_ref[...] + bias_ref[...]


def _fc_int_kernel_acc(x_ref, w_ref, scale_ref, bias_ref, o_ref, acc_ref):
    """Non-f32 output: keep an f32 VMEM accumulator, cast in the epilogue."""
    k = pl.program_id(2)

    @pl.when(k == 0)
    def _():
        acc_ref[...] = jnp.zeros_like(acc_ref)

    acc_ref[...] += lax.dot_general(
        x_ref[...],
        w_ref[...],
        dimension_numbers=(((1,), (1,)), ((), ())),
        preferred_element_type=jnp.float32,
    )

    @pl.when(k == pl.num_programs(2) - 1)
    def _():
        y = acc_ref[...] * scale_ref[...] + bias_ref[...]
        o_ref[...] = y.astype(o_ref.dtype)


def pack_fc_int_params(weight, scale, bias, *, tn=512, tk=2048,
                       compute_dtype=jnp.bfloat16):
    """One-time (model-load) packing, OUTSIDE the per-call jit.

    Pads W/scale/bias to (tn, tk) multiples and casts W to the MXU compute
    dtype, so no per-call jnp.pad / transpose / cast of the weight is needed.
    Returns (w_packed [Np, Kp], scale2d [1, Np], bias2d [1, Np], N, tn, tk).
    """
    weight = jnp.asarray(weight)
    N, K = weight.shape
    tn = min(tn, _round_up(N, 128))
    tk = min(tk, _round_up(K, 128))
    Np, Kp = _round_up(N, tn), _round_up(K, tk)
    if (Np, Kp) != (N, K):
        weight = jnp.pad(weight, ((0, Np - N), (0, Kp - K)))
    weight = weight.astype(compute_dtype)
    scale2d = jnp.pad(jnp.asarray(scale, jnp.float32), (0, Np - N)).reshape(1, Np)
    bias2d = jnp.pad(jnp.asarray(bias, jnp.float32), (0, Np - N)).reshape(1, Np)
    return weight, scale2d, bias2d, N, tn, tk


@functools.partial(jax.jit, static_argnames=("out_features", "tn", "tk", "tm"))
def fc_int(x, w_packed, scale2d, bias2d, *, out_features, tn, tk, tm=512):
    """x: [M, in_f]; w_packed/scale2d/bias2d: from pack_fc_int_params."""
    M, K = x.shape
    Np, Kp = w_packed.shape
    assert Kp >= K and Kp % tk == 0, "packed K must be a multiple of tk"
    assert Np % tn == 0, "packed N must be a multiple of tn"
    assert Np >= out_features

    out_dtype = x.dtype
    compute_dtype = w_packed.dtype

    # Feed the MXU a narrow dtype; keep f32 accumulation + epilogue.
    if x.dtype != compute_dtype:
        if not jnp.issubdtype(compute_dtype, jnp.floating):
            raise ValueError("integer/quantized compute dtype requires pre-quantized x")
        x = x.astype(compute_dtype)

    # Dtype-aware sublane clamp for the M tile.
    sub = _sublane_multiple(compute_dtype)
    tm = min(tm, _round_up(M, sub))
    Mp = _round_up(M, tm)
    if (Mp, Kp) != (M, K):
        # x pad only (small); zero K-padding contributes nothing to the dot.
        x = jnp.pad(x, ((0, Mp - M), (0, Kp - K)))

    # Guarantee >= 2 blocks on a parallel axis when possible (v7x has 2 TCs).
    if Mp // tm == 1 and Np // tn == 1 and tn > 128:
        tn = tn // 2 if tn % 256 == 0 else 128

    grid = (Mp // tm, Np // tn, Kp // tk)
    n_k_steps = grid[2]

    use_acc = out_dtype != jnp.float32
    kernel = _fc_int_kernel_acc if use_acc else _fc_int_kernel_direct
    scratch_shapes = [pltpu.VMEM((tm, tn), jnp.float32)] if use_acc else []

    # Triple-buffer the weight stream when there are enough K steps to hide DMA.
    if n_k_steps >= 3:
        w_spec = pl.BlockSpec((tn, tk), lambda i, j, k: (j, k),
                              pipeline_mode=pl.Buffered(3))
        n_w_bufs = 3
    else:
        w_spec = pl.BlockSpec((tn, tk), lambda i, j, k: (j, k))
        n_w_bufs = 2

    bx = jnp.dtype(compute_dtype).itemsize
    bw = jnp.dtype(compute_dtype).itemsize
    bo = jnp.dtype(out_dtype).itemsize

    # Scoped VMEM: buffered inputs + double-buffered output + optional acc;
    # cap at 56 MiB to stay safe on v7x's 64 MiB/TC (v5e/v6e have 128 MiB).
    vmem_bytes = (
        2 * tm * tk * bx
        + n_w_bufs * tn * tk * bw
        + 4 * tn * 4
        + 2 * tm * tn * bo
        + (tm * tn * 4 if use_acc else 0)
    )
    vmem_limit = int(min(max(int(1.5 * vmem_bytes), 32 << 20), 56 << 20))

    N = out_features
    cost = pl.CostEstimate(
        flops=2 * M * N * K,
        transcendentals=0,
        # Actual streaming: x re-read per j block, W re-read per i block.
        bytes_accessed=(
            (Np // tn) * M * K * bx
            + (Mp // tm) * N * K * bw
            + M * N * bo
            + 2 * N * 4
        ),
    )

    out = pl.pallas_call(
        kernel,
        out_shape=jax.ShapeDtypeStruct((Mp, Np), out_dtype),
        grid_spec=pltpu.PrefetchScalarGridSpec(
            num_scalar_prefetch=0,
            grid=grid,
            in_specs=[
                pl.BlockSpec((tm, tk), lambda i, j, k: (i, k)),   # x tile
                w_spec,                                           # W tile (native [N, K])
                pl.BlockSpec((1, tn), lambda i, j, k: (0, j)),    # scale row
                pl.BlockSpec((1, tn), lambda i, j, k: (0, j)),    # bias row
            ],
            out_specs=pl.BlockSpec((tm, tn), lambda i, j, k: (i, j)),
            scratch_shapes=scratch_shapes,
        ),
        compiler_params=pltpu.CompilerParams(
            dimension_semantics=("parallel", "parallel", "arbitrary"),
            vmem_limit_bytes=vmem_limit,
        ),
        cost_estimate=cost,
    )(x, w_packed, scale2d, bias2d)

    if (Mp, Np) != (M, N):
        out = out[:M, :N]
    return out


if __name__ == "__main__":
    # Small, deterministic problem: batch=8, in_features=32, out_features=64.
    B, IN_F, OUT_F = 8, 32, 64

    key = jax.random.PRNGKey(0)
    kx, kw, ks, kb = jax.random.split(key, 4)

    x = jax.random.normal(kx, (B, IN_F), dtype=jnp.float32)
    # nn.Linear(in, out, bias=False).weight has shape [out, in]
    weight = jax.random.normal(kw, (OUT_F, IN_F), dtype=jnp.float32) * 0.1
    # Module inits scale=ones, bias=zeros; perturb deterministically so the
    # elementwise path is actually exercised.
    scale = jnp.ones((OUT_F,), jnp.float32) + 0.01 * jax.random.normal(ks, (OUT_F,), jnp.float32)
    bias = jnp.zeros((OUT_F,), jnp.float32) + 0.01 * jax.random.normal(kb, (OUT_F,), jnp.float32)

    # One-time packing at "model load": pad once + cast W to bf16 for the MXU.
    w_p, scale2d, bias2d, n_out, tn, tk = pack_fc_int_params(weight, scale, bias)

    out = fc_int(x, w_p, scale2d, bias2d, out_features=n_out, tn=tn, tk=tk)
    out = jax.block_until_ready(out)

    # Reference check (plain fp32 JAX) — PyTorch forward semantics.
    ref = (x @ weight.T) * scale.reshape(1, -1) + bias.reshape(1, -1)
    assert out.shape == (B, OUT_F)
    assert out.dtype == x.dtype
    # bf16 operands on the MXU (f32 accumulation) -> relaxed tolerance vs fp32 ref.
    assert jnp.allclose(out, ref, atol=2e-2, rtol=2e-2), "mismatch vs reference"

    print("KERNEL_OK")
</pallas_src>

<mosaic_0001>
module attributes {stable_mosaic.version = 11 : i64} {
  func.func @_fc_int_kernel_direct(%arg0: i32, %arg1: i32, %arg2: i32, %arg3: memref<16x128xbf16, #tpu.memory_space<vmem>>, %arg4: memref<128x128xbf16, #tpu.memory_space<vmem>>, %arg5: memref<1x128xf32, #tpu.memory_space<vmem>>, %arg6: memref<1x128xf32, #tpu.memory_space<vmem>>, %arg7: memref<16x128xf32, #tpu.memory_space<vmem>>) attributes {dimension_semantics = [#tpu.dimension_semantics<parallel>, #tpu.dimension_semantics<parallel>, #tpu.dimension_semantics<arbitrary>], iteration_bounds = array<i64: 1, 1, 1>, scalar_prefetch = 0 : i64, scratch_operands = 0 : i64, tpu.core_type = #tpu.core_type<tc>, window_params = [{transform_indices = @transform_0, window_bounds = array<i64: 16, 128>}, {transform_indices = @transform_1, window_bounds = array<i64: 128, 128>}, {transform_indices = @transform_2, window_bounds = array<i64: 1, 128>}, {transform_indices = @transform_3, window_bounds = array<i64: 1, 128>}, {transform_indices = @transform_4, window_bounds = array<i64: 16, 128>}]} {
    %c0_i32 = arith.constant 0 : i32
    %0 = arith.cmpi eq, %arg2, %c0_i32 : i32
    %1 = arith.extui %0 : i1 to i32
    %c0_i32_0 = arith.constant 0 : i32
    %2 = arith.cmpi ne, %1, %c0_i32_0 : i32
    scf.if %2 {
      %cst_10 = arith.constant 0.000000e+00 : f32
      %12 = vector.broadcast %cst_10 : f32 to vector<16x128xf32>
      %c0_11 = arith.constant 0 : index
      %c0_12 = arith.constant 0 : index
      %13 = vector.load %arg7[%c0_11, %c0_12] : memref<16x128xf32, #tpu.memory_space<vmem>>, vector<16x128xf32>
      tpu.vector_store %arg7[%c0_11, %c0_12], %12 {strides = array<i32>} : memref<16x128xf32, #tpu.memory_space<vmem>>, vector<16x128xf32>,
    } else {
    }
    %c0 = arith.constant 0 : index
    %c0_1 = arith.constant 0 : index
    %3 = vector.load %arg7[%c0, %c0_1] : memref<16x128xf32, #tpu.memory_space<vmem>>, vector<16x128xf32>
    %c0_2 = arith.constant 0 : index
    %c0_3 = arith.constant 0 : index
    %4 = vector.load %arg3[%c0_2, %c0_3] : memref<16x128xbf16, #tpu.memory_space<vmem>>, vector<16x128xbf16>
    %c0_4 = arith.constant 0 : index
    %c0_5 = arith.constant 0 : index
    %5 = vector.load %arg4[%c0_4, %c0_5] : memref<128x128xbf16, #tpu.memory_space<vmem>>, vector<128x128xbf16>
    %cst = arith.constant dense<0.000000e+00> : vector<16x128xf32>
    %6 = tpu.matmul %4, %5, %cst {dimension_numbers = #tpu.dot_dimension_numbers<[1], [1], [0], [0], [0, 0, 1, 0], [], []>} : vector<16x128xbf16>, vector<128x128xbf16>, vector<16x128xf32> -> vector<16x128xf32>
    %7 = arith.addf %3, %6 : vector<16x128xf32>
    %c0_6 = arith.constant 0 : index
    %c0_7 = arith.constant 0 : index
    %8 = vector.load %arg7[%c0_6, %c0_7] : memref<16x128xf32, #tpu.memory_space<vmem>>, vector<16x128xf32>
    tpu.vector_store %arg7[%c0_6, %c0_7], %7 {strides = array<i32>} : memref<16x128xf32, #tpu.memory_space<vmem>>, vector<16x128xf32>,
    %c0_i32_8 = arith.constant 0 : i32
    %9 = arith.cmpi eq, %arg2, %c0_i32_8 : i32
    %10 = arith.extui %9 : i1 to i32
    %c0_i32_9 = arith.constant 0 : i32
    %11 = arith.cmpi ne, %10, %c0_i32_9 : i32
    scf.if %11 {
      %c0_10 = arith.constant 0 : index
      %c0_11 = arith.constant 0 : index
      %12 = vector.load %arg7[%c0_10, %c0_11] : memref<16x128xf32, #tpu.memory_space<vmem>>, vector<16x128xf32>
      %c0_12 = arith.constant 0 : index
      %c0_13 = arith.constant 0 : index
      %13 = vector.load %arg5[%c0_12, %c0_13] : memref<1x128xf32, #tpu.memory_space<vmem>>, vector<1x128xf32>
      %14 = vector.broadcast %13 : vector<1x128xf32> to vector<16x128xf32>
      %15 = arith.mulf %12, %14 : vector<16x128xf32>
      %c0_14 = arith.constant 0 : index
      %c0_15 = arith.constant 0 : index
      %16 = vector.load %arg6[%c0_14, %c0_15] : memref<1x128xf32, #tpu.memory_space<vmem>>, vector<1x128xf32>
      %17 = vector.broadcast %16 : vector<1x128xf32> to vector<16x128xf32>
      %18 = arith.addf %15, %17 : vector<16x128xf32>
      %c0_16 = arith.constant 0 : index
      %c0_17 = arith.constant 0 : index
      %19 = vector.load %arg7[%c0_16, %c0_17] : memref<16x128xf32, #tpu.memory_space<vmem>>, vector<16x128xf32>
      tpu.vector_store %arg7[%c0_16, %c0_17], %18 {strides = array<i32>} : memref<16x128xf32, #tpu.memory_space<vmem>>, vector<16x128xf32>,
    } else {
    }
    return
  }
  func.func @transform_0(%arg0: i32, %arg1: i32, %arg2: i32) -> (i32, i32) {
    %c0_i32 = arith.constant 0 : i32
    return %arg0, %arg2 : i32, i32
  }
  func.func @transform_1(%arg0: i32, %arg1: i32, %arg2: i32) -> (i32, i32) {
    %c0_i32 = arith.constant 0 : i32
    return %arg1, %arg2 : i32, i32
  }
  func.func @transform_2(%arg0: i32, %arg1: i32, %arg2: i32) -> (i32, i32) {
    %c0_i32 = arith.constant 0 : i32
    %c0_i32_0 = arith.constant 0 : i32
    return %c0_i32, %arg1 : i32, i32
  }
  func.func @transform_3(%arg0: i32, %arg1: i32, %arg2: i32) -> (i32, i32) {
    %c0_i32 = arith.constant 0 : i32
    %c0_i32_0 = arith.constant 0 : i32
    return %c0_i32, %arg1 : i32, i32
  }
  func.func @transform_4(%arg0: i32, %arg1: i32, %arg2: i32) -> (i32, i32) {
    %c0_i32 = arith.constant 0 : i32
    return %arg0, %arg1 : i32, i32
  }
}

</mosaic_0001>

<bundles_post_ra>
// kernel: fc_int.1
= control target key start
LH: loop header
LB: loop body
LE: loop exit
PB: predicated region body
PF: predicated region fallthrough
CT: control target
= control target key end

     0   :  { %9 = vsyncpa [#allocation3], 0  ;;  %s232_s18 = smov [#allocation2]   ;;  %s233_s20 = smov 64   ;;  %s278_s0 = inlined_call_operand.vmem [shape: bf16[16,128], index: 0, kind: input, shape index: {}]   ;;  %s279_s1 = inlined_call_operand.hbm [shape: bf16[128,128], index: 1, kind: input, shape index: {}]   ;;  %s280_s2 = inlined_call_operand.vmem [shape: f32[1,128], index: 2, kind: input, shape index: {}]   ;;  %s281_s3 = inlined_call_operand.vmem [shape: f32[1,128], index: 3, kind: input, shape index: {}]   ;;  %s282_s4 = inlined_call_operand.vmem [shape: f32[16,128], index: 4, kind: output, shape index: {}]  }
   0x1   :  { %s16_s17 = sshll.u32 %s279_s1, 4  ;;  %s18_s19 = sshll.u32 %s232_s18, 4  ;;  %s17_s17 = int_to_ptr.hbm [resolvable:$true] %s16_s17  ;;  %s19_s19 = int_to_ptr.vmem [resolvable:$true] %s18_s19 }
   0x2   :  { %s234_s21 = smov 4  }
   0x3   :  { %24 = dma.hbm_to_vmem [thread:$0]  %s17_s17, 1024, %s19_s19, [#allocation3], %s233_s20, %s233_s20, %s234_s21  }
   0x4   :  { %230 = dma.done.wait [#allocation3], 1024  }
   0x5   :  { %231 = vsyncadd [#allocation3], 4294966272  ;;  %v199_v0 = vld [vmem:[#allocation2 + $0x38] sm:$0xff]  ;;  %v198_v1 = vld [vmem:[#allocation2 + $0x30] sm:$0xff] }
   0x6   :  { %113 = vmatpush.bf16.xpose.msra.mxu0 %v199_v0  ;;  %v197_v2 = vld [vmem:[#allocation2 + $0x28] sm:$0xff]  ;;  %v196_v3 = vld [vmem:[#allocation2 + $0x20] sm:$0xff]  ;;  %v195_v4 = vld [vmem:[#allocation2 + $0x18] sm:$0xff] }
   0x7   :  { %v194_v5 = vld [vmem:[#allocation2 + $0x10] sm:$0xff]  ;;  %v193_v6 = vld [vmem:[#allocation2 + $0x8] sm:$0xff]  ;;  %v192_v7 = vld [vmem:[#allocation2] sm:$0xff] }
   0x8   :  { %v191_v8 = vld [vmem:[%s278_s0] sm:$0xff] }
   0x9   :  { %v204_v9 = vld [vmem:[%s280_s2] ss:$0 sm:$0xff] }
   0xa   :  { %v205_v11 = vld [vmem:[%s281_s3] ss:$0 sm:$0xff] }
   0xe   :  { %114 = vmatpush.bf16.xpose.msra.mxu0 %v198_v1 }
  0x16   :  { %115 = vmatpush.bf16.xpose.msra.mxu0 %v197_v2 }
  0x1e   :  { %116 = vmatpush.bf16.xpose.msra.mxu0 %v196_v3 }
  0x26   :  { %117 = vmatpush.bf16.xpose.msra.mxu0 %v195_v4 }
  0x2e   :  { %118 = vmatpush.bf16.xpose.msra.mxu0 %v194_v5 }
  0x36   :  { %119 = vmatpush.bf16.xpose.msra.mxu0 %v193_v6 }
  0x3e   :  { %120 = vmatpush.bf16.xpose.msra.mxu0 %v192_v7 }
  0x45   :  { %121 = vmatmul.bf16.vlgmr.msra.gmra.mxu0 %v191_v8 }
  0xc2   :  { %v122_v10 = vpop.f32.mrf.mxu0 }
  0xc3   :  { %v140_v12 = vmul.f32 %v204_v9, %v122_v10 }
  0xc5   :  { %v146_v13 = vadd.f32 %v205_v11, %v140_v12 }
  0xc7   :  { %148 = vst [vmem:[%s282_s4] sm:$0xff] %v146_v13 }
  0xca   :  { %v124_v14 = vpop.f32.mrf.mxu0 }
  0xcb   :  { %v141_v15 = vmul.f32 %v204_v9, %v124_v14 }
  0xcd   :  { %v147_v16 = vadd.f32 %v205_v11, %v141_v15 }
  0xcf   :  { %149 = vst [vmem:[%s282_s4 + $0x8] sm:$0xff] %v147_v16 }
  0xd0   :  { %154 = vsyncpa [#allocation3], 1 }

</bundles_post_ra>
